<compile_context>
chip_gen: v5e
topology: v5e:2x2
jax: 0.10.0
libtpu: 0.0.40
codegen_flags: <defaults>
</compile_context>

<pallas_src>
import jax
import jax.numpy as jnp
from jax.experimental import pallas as pl
from jax.experimental.pallas import tpu as pltpu


def _round_up(x, m):
    return ((x + m - 1) // m) * m


def critic_kernel(x_ref, w1_ref, b1_ref, w2_ref, b2_ref, o_ref):
    # Layer 1 on the MXU: (TB, D) @ (D, 128), bias + ReLU on the VPU.
    h = jnp.dot(x_ref[...], w1_ref[...], preferred_element_type=jnp.float32)
    h = jnp.maximum(h + b1_ref[...], 0.0)
    # Layer 2 also on the MXU (full K=128 depth): (TB, 128) @ (128, 1).
    out = jnp.dot(h, w2_ref[...], preferred_element_type=jnp.float32)
    o_ref[...] = (out + b2_ref[0]).astype(o_ref.dtype)


def centralised_critic_forward(x, w1, b1, w2, b2, *, tile_b=8192):
    """x: (B, state_dim*n_ag) float32 -> (B, 1) float32."""
    B, D = x.shape
    H = w1.shape[1]

    # b2: a single scalar, kept as a 1-D SMEM ref.
    b2s = b2.reshape(1)

    # Effective batch tile: large (amortize per-step overhead), multiple of 8,
    # never (much) larger than the batch itself.
    tb = min(tile_b, _round_up(B, 8))
    # Prefer >=2 grid steps for larger batches so the "parallel" axis can
    # shard across both TensorCores on v7x (harmless on v5e/v6e).
    if B > 2048 and pl.cdiv(B, tb) < 2:
        tb = _round_up(pl.cdiv(B, 2), 8)
    grid = (pl.cdiv(B, tb),)

    # NOTE: when tb does not divide B, the last block reads a few undefined
    # rows past the end of x; their outputs are dropped by Pallas' boundary
    # masking on the (B, 1) output, so no padding pass over x is needed.
    out = pl.pallas_call(
        critic_kernel,
        out_shape=jax.ShapeDtypeStruct((B, 1), jnp.float32),
        grid=grid,
        in_specs=[
            # x: streamed per batch tile (double-buffered by the pipeline).
            pl.BlockSpec((tb, D), lambda i: (i, 0)),
            # Weights / biases: constant block index -> VMEM-resident.
            pl.BlockSpec((D, H), lambda i: (0, 0)),
            pl.BlockSpec((1, H), lambda i: (0, 0)),
            pl.BlockSpec((H, 1), lambda i: (0, 0)),
            # b2: scalar in SMEM.
            pl.BlockSpec(memory_space=pltpu.MemorySpace.SMEM),
        ],
        out_specs=pl.BlockSpec((tb, 1), lambda i: (i, 0)),
        compiler_params=pltpu.CompilerParams(
            dimension_semantics=("parallel",),
            vmem_limit_bytes=32 * 1024 * 1024,
        ),
    )(x, w1, b1, w2, b2s)
    return out


def init_params(key, state_dim, n_ag, hidden=128):
    """Deterministic init matching nn.Linear shapes (stored transposed)."""
    in_dim = state_dim * n_ag
    k1, k2, k3, k4 = jax.random.split(key, 4)
    # PyTorch Linear default: U(-1/sqrt(fan_in), 1/sqrt(fan_in))
    lim1 = 1.0 / jnp.sqrt(in_dim)
    lim2 = 1.0 / jnp.sqrt(hidden)
    w1 = jax.random.uniform(k1, (in_dim, hidden), jnp.float32, -lim1, lim1)
    b1 = jax.random.uniform(k2, (1, hidden), jnp.float32, -lim1, lim1)
    w2 = jax.random.uniform(k3, (hidden, 1), jnp.float32, -lim2, lim2)
    b2 = jax.random.uniform(k4, (1, 1), jnp.float32, -lim2, lim2)
    return w1, b1, w2, b2


def _reference(x, w1, b1, w2, b2):
    return jnp.maximum(x @ w1 + b1, 0.0) @ w2 + b2


if __name__ == "__main__":
    state_dim, n_ag = 8, 4
    key = jax.random.PRNGKey(0)
    kx, kp, kx2 = jax.random.split(key, 3)
    w1, b1, w2, b2 = init_params(kp, state_dim, n_ag)

    # Small shape consistent with the module: batch=8, in_dim=32.
    x = jax.random.normal(kx, (8, state_dim * n_ag), dtype=jnp.float32)
    out = jax.block_until_ready(centralised_critic_forward(x, w1, b1, w2, b2))
    ref = _reference(x, w1, b1, w2, b2)
    assert out.shape == (8, 1)
    assert jnp.allclose(out, ref, atol=1e-4, rtol=1e-4)

    # Also exercise the multi-step grid + ragged (non-divisible) last block.
    x2 = jax.random.normal(kx2, (2050, state_dim * n_ag), dtype=jnp.float32)
    out2 = jax.block_until_ready(centralised_critic_forward(x2, w1, b1, w2, b2))
    ref2 = _reference(x2, w1, b1, w2, b2)
    assert out2.shape == (2050, 1)
    assert jnp.allclose(out2, ref2, atol=1e-4, rtol=1e-4)

    print("KERNEL_OK")
</pallas_src>

<mosaic_0001>
module attributes {stable_mosaic.version = 11 : i64} {
  func.func @critic_kernel(%arg0: i32, %arg1: memref<8x32xf32, #tpu.memory_space<vmem>>, %arg2: memref<32x128xf32, #tpu.memory_space<vmem>>, %arg3: memref<1x128xf32, #tpu.memory_space<vmem>>, %arg4: memref<128x1xf32, #tpu.memory_space<vmem>>, %arg5: memref<1xf32, #tpu.memory_space<smem>>, %arg6: memref<8x1xf32, #tpu.memory_space<vmem>>) attributes {dimension_semantics = [#tpu.dimension_semantics<parallel>], iteration_bounds = array<i64: 1>, scalar_prefetch = 0 : i64, scratch_operands = 0 : i64, tpu.core_type = #tpu.core_type<tc>, window_params = [{transform_indices = @transform_0, window_bounds = array<i64: 8, 32>}, {pipeline_mode = #tpu.pipeline_mode<synchronous>, transform_indices = @transform_1, window_bounds = array<i64: 32, 128>}, {pipeline_mode = #tpu.pipeline_mode<synchronous>, transform_indices = @transform_2, window_bounds = array<i64: 1, 128>}, {pipeline_mode = #tpu.pipeline_mode<synchronous>, transform_indices = @transform_3, window_bounds = array<i64: 128, 1>}, {transform_indices = @transform_4, window_bounds = array<i64: 1>}, {transform_indices = @transform_5, window_bounds = array<i64: 8, 1>}]} {
    %c0 = arith.constant 0 : index
    %c0_0 = arith.constant 0 : index
    %0 = vector.load %arg1[%c0, %c0_0] : memref<8x32xf32, #tpu.memory_space<vmem>>, vector<8x32xf32>
    %c0_1 = arith.constant 0 : index
    %c0_2 = arith.constant 0 : index
    %1 = vector.load %arg2[%c0_1, %c0_2] : memref<32x128xf32, #tpu.memory_space<vmem>>, vector<32x128xf32>
    %cst = arith.constant dense<0.000000e+00> : vector<8x128xf32>
    %2 = tpu.matmul %0, %1, %cst {dimension_numbers = #tpu.dot_dimension_numbers<[1], [0], [0], [1], [0, 0, 1, 1], [], []>} : vector<8x32xf32>, vector<32x128xf32>, vector<8x128xf32> -> vector<8x128xf32>
    %c0_3 = arith.constant 0 : index
    %c0_4 = arith.constant 0 : index
    %3 = vector.load %arg3[%c0_3, %c0_4] : memref<1x128xf32, #tpu.memory_space<vmem>>, vector<1x128xf32>
    %4 = vector.broadcast %3 : vector<1x128xf32> to vector<8x128xf32>
    %5 = arith.addf %2, %4 : vector<8x128xf32>
    %cst_5 = arith.constant 0.000000e+00 : f32
    %6 = vector.broadcast %cst_5 : f32 to vector<8x128xf32>
    %7 = arith.maximumf %5, %6 : vector<8x128xf32>
    %c0_6 = arith.constant 0 : index
    %c0_7 = arith.constant 0 : index
    %8 = vector.load %arg4[%c0_6, %c0_7] : memref<128x1xf32, #tpu.memory_space<vmem>>, vector<128x1xf32>
    %cst_8 = arith.constant dense<0.000000e+00> : vector<8x1xf32>
    %9 = tpu.matmul %7, %8, %cst_8 {dimension_numbers = #tpu.dot_dimension_numbers<[1], [0], [0], [1], [0, 0, 1, 1], [], []>} : vector<8x128xf32>, vector<128x1xf32>, vector<8x1xf32> -> vector<8x1xf32>
    %c0_9 = arith.constant 0 : index
    %10 = memref.load %arg5[%c0_9] : memref<1xf32, #tpu.memory_space<smem>>
    %11 = vector.broadcast %10 : f32 to vector<8x1xf32>
    %12 = arith.addf %9, %11 : vector<8x1xf32>
    %c0_10 = arith.constant 0 : index
    %c0_11 = arith.constant 0 : index
    %13 = vector.load %arg6[%c0_10, %c0_11] : memref<8x1xf32, #tpu.memory_space<vmem>>, vector<8x1xf32>
    tpu.vector_store %arg6[%c0_10, %c0_11], %12 {strides = array<i32>} : memref<8x1xf32, #tpu.memory_space<vmem>>, vector<8x1xf32>,
    return
  }
  func.func @transform_0(%arg0: i32) -> (i32, i32) {
    %c0_i32 = arith.constant 0 : i32
    %c0_i32_0 = arith.constant 0 : i32
    return %arg0, %c0_i32 : i32, i32
  }
  func.func @transform_1(%arg0: i32) -> (i32, i32) {
    %c0_i32 = arith.constant 0 : i32
    %c0_i32_0 = arith.constant 0 : i32
    %c0_i32_1 = arith.constant 0 : i32
    return %c0_i32, %c0_i32_0 : i32, i32
  }
  func.func @transform_2(%arg0: i32) -> (i32, i32) {
    %c0_i32 = arith.constant 0 : i32
    %c0_i32_0 = arith.constant 0 : i32
    %c0_i32_1 = arith.constant 0 : i32
    return %c0_i32, %c0_i32_0 : i32, i32
  }
  func.func @transform_3(%arg0: i32) -> (i32, i32) {
    %c0_i32 = arith.constant 0 : i32
    %c0_i32_0 = arith.constant 0 : i32
    %c0_i32_1 = arith.constant 0 : i32
    return %c0_i32, %c0_i32_0 : i32, i32
  }
  func.func @transform_4(%arg0: i32) -> i32 {
    %c0_i32 = arith.constant 0 : i32
    %c0_i32_0 = arith.constant 0 : i32
    return %c0_i32 : i32
  }
  func.func @transform_5(%arg0: i32) -> (i32, i32) {
    %c0_i32 = arith.constant 0 : i32
    %c0_i32_0 = arith.constant 0 : i32
    return %arg0, %c0_i32 : i32, i32
  }
}

</mosaic_0001>

<bundles_post_ra>
// kernel: tpu_custom_call.1
= control target key start
LH: loop header
LB: loop body
LE: loop exit
PB: predicated region body
PF: predicated region fallthrough
CT: control target
= control target key end

     0   :  { %vm30_vm0 = vcmask 261120   ;;  %vm93_vm1 = vcmask 7168   ;;  %s203_s1 = inlined_call_operand.vmem [shape: f32[32,128], index: 1, kind: input, shape index: {}]   ;;  %s204_s3 = inlined_call_operand.vmem [shape: f32[128,1], index: 3, kind: input, shape index: {}]   ;;  %s205_s0 = inlined_call_operand.vmem [shape: f32[8,32], index: 0, kind: input, shape index: {}]   ;;  %s206_s2 = inlined_call_operand.vmem [shape: f32[1,128], index: 2, kind: input, shape index: {}]   ;;  %s207_s4 = inlined_call_operand.<no memory space> [shape: f32[1], index: 4, kind: input, shape index: {}]   ;;  %s208_s5 = inlined_call_operand.vmem [shape: f32[8,1], index: 5, kind: output, shape index: {}]  }
   0x1   :  { %v25_v0 = vld [vmem:[%s203_s1 + $0x18] sm:$0xff]  ;;  %v24_v1 = vld [vmem:[%s203_s1 + $0x10] sm:$0xff]  ;;  %v23_v3 = vld [vmem:[%s203_s1 + $0x8] sm:$0xff]  ;;  %v72_v25 = vstv %s207_s4 }
   0x2   :  { %46 = vmatpush.msra.mxu0 %v25_v0  ;;  %v70_v2 = vld [vmem:[%s204_s3 + $0x78] sm:$0xff]  ;;  %v69_v4 = vld [vmem:[%s204_s3 + $0x70] sm:$0xff]  ;;  %v68_v5 = vld [vmem:[%s204_s3 + $0x68] sm:$0xff] }
   0x3   :  { %73 = vmatpush.msra.mxu1 %v70_v2  ;;  %v22_v6 = vld [vmem:[%s203_s1] sm:$0xff]  ;;  %v66_v9 = vld [vmem:[%s204_s3 + $0x58] sm:$0xff]  ;;  %v65_v10 = vld [vmem:[%s204_s3 + $0x50] sm:$0xff] }
   0x4   :  { %47 = vmatpush.msra.mxu0 %v24_v1  ;;  %v21_v7 = vld [vmem:[%s205_s0] sm:$0xff]  ;;  %v64_v11 = vld [vmem:[%s204_s3 + $0x48] sm:$0xff]  ;;  %v62_v13 = vld [vmem:[%s204_s3 + $0x38] sm:$0xff] }
   0x5   :  { %74 = vmatpush.msra.mxu1 %v69_v4  ;;  %v67_v8 = vld [vmem:[%s204_s3 + $0x60] sm:$0xff]  ;;  %v61_v14 = vld [vmem:[%s204_s3 + $0x30] sm:$0xff]  ;;  %v60_v15 = vld [vmem:[%s204_s3 + $0x28] sm:$0xff] }
   0x6   :  { %48 = vmatpush.msra.mxu0 %v23_v3  ;;  %v63_v12 = vld [vmem:[%s204_s3 + $0x40] sm:$0xff]  ;;  %v58_v17 = vld [vmem:[%s204_s3 + $0x18] sm:$0xff]  ;;  %v57_v18 = vld [vmem:[%s204_s3 + $0x10] sm:$0xff] }
   0x7   :  { %75 = vmatpush.msra.mxu1 %v68_v5  ;;  %v59_v16 = vld [vmem:[%s204_s3 + $0x20] sm:$0xff]  ;;  %v56_v19 = vld [vmem:[%s204_s3 + $0x8] sm:$0xff] }
   0x8   :  { %49 = vmatpush.msra.mxu0 %v22_v6  ;;  %v55_v20 = vld [vmem:[%s204_s3] sm:$0xff] }
   0x9   :  { %99 = vmatmul.msk.f32.vlgmr.msra.gmra.mxu0 %vm30_vm0, %v21_v7  ;;  %76 = vmatpush.msra.mxu1 %v67_v8  ;;  %v100_v21 = vld [vmem:[%s206_s2] ss:$0 sm:$0xff] }
   0xb   :  { %77 = vmatpush.msra.mxu1 %v66_v9 }
   0xd   :  { %78 = vmatpush.msra.mxu1 %v65_v10 }
   0xf   :  { %79 = vmatpush.msra.mxu1 %v64_v11 }
  0x11   :  { %80 = vmatpush.msra.mxu1 %v63_v12 }
  0x13   :  { %81 = vmatpush.msra.mxu1 %v62_v13 }
  0x15   :  { %82 = vmatpush.msra.mxu1 %v61_v14 }
  0x17   :  { %83 = vmatpush.msra.mxu1 %v60_v15 }
  0x19   :  { %84 = vmatpush.msra.mxu1 %v59_v16 }
  0x1b   :  { %85 = vmatpush.msra.mxu1 %v58_v17 }
  0x1d   :  { %86 = vmatpush.msra.mxu1 %v57_v18 }
  0x1f   :  { %87 = vmatpush.msra.mxu1 %v56_v19 }
  0x21   :  { %88 = vmatpush.msra.mxu1 %v55_v20 }
  0x86   :  { %v51_v22 = vpop.f32.mrf.mxu0 }
  0x87   :  { %v52_v23 = vadd.f32 %v100_v21, %v51_v22 }
  0x89   :  { %v54_v24 = vmax.f32 %v52_v23, 0.0 }
  0x8b   :  { %89 = vmatmul.f32.vlgmr.msra.gmra.mxu1 %v54_v24 }
 0x108   :  { %v90_v26 = vpop.f32.mrf.mxu1 }
 0x109   :  { %v91_v27 = vadd.f32 %v90_v26, %v72_v25 }
 0x10b   :  { %94 = vst.msk [vmem:[%s208_s5] sm:$0xff] %vm93_vm1, %v91_v27 }

</bundles_post_ra>
